<compile_context>
chip_gen: v7x
topology: tpu7x:2x2x1
jax: 0.10.0
libtpu: 0.0.40
codegen_flags: <defaults>
</compile_context>

<pallas_src>
import math

import jax
import jax.numpy as jnp
from jax.experimental import pallas as pl
from jax.experimental.pallas import tpu as pltpu


# =====================================================================
# Fused Pallas kernel:  out[b] = wt @ (x[b] @ ws) + C
# =====================================================================
def _projection_head_kernel(x_ref, ws_ref, wt_ref, c_ref, o_ref):
    B = x_ref.shape[0]
    ws = ws_ref[...]          # (Cin,  Cout)
    wt = wt_ref[...]          # (Tout, Tin)
    c = c_ref[...]            # (Tout, Cout) -- all biases pre-folded
    for b in range(B):        # tiny static unroll (B is small and static)
        y = jnp.dot(x_ref[b], ws, preferred_element_type=jnp.float32)   # (Tin,  Cout)
        o_ref[b] = jnp.dot(wt, y, preferred_element_type=jnp.float32) + c  # (Tout, Cout)


# =====================================================================
# One-time parameter preparation (NOT in the per-call path)
# =====================================================================
def prepare_params(params):
    ws = params["s_fc"]["w"]                       # (Cin, Cout)
    bs = params["s_fc"]["b"]                       # (Cout,)
    w1, b1 = params["t_fc1"]["w"], params["t_fc1"]["b"]   # (Tin, H), (H,)
    w2, b2 = params["t_fc2"]["w"], params["t_fc2"]["b"]   # (H, Tout), (Tout,)

    wt = (w1 @ w2).T                               # (Tout, Tin)
    bt = b1 @ w2 + b2                              # (Tout,)
    # Fold the s_fc bias too:  wt @ (1 bs) = rowsum(wt) outer bs
    c = jnp.sum(wt, axis=1, keepdims=True) * bs[None, :] + bt[:, None]  # (Tout, Cout)
    return {"ws": ws, "wt": wt, "c": c}


@jax.jit
def projection_head(x, prepared):
    """x: (B, in_block, in_embd) -> (B, out_block, out_embd)."""
    B = x.shape[0]
    Cout = prepared["ws"].shape[1]
    Tout = prepared["wt"].shape[0]

    vmem = pl.BlockSpec(memory_space=pltpu.MemorySpace.VMEM)
    return pl.pallas_call(
        _projection_head_kernel,
        out_shape=jax.ShapeDtypeStruct((B, Tout, Cout), jnp.float32),
        in_specs=[vmem, vmem, vmem, vmem],
        out_specs=vmem,
    )(x, prepared["ws"], prepared["wt"], prepared["c"])


# =====================================================================
# Pure-JAX reference (mirrors the PyTorch forward exactly)
# =====================================================================
def projection_head_reference(x, p):
    y = x @ p["s_fc"]["w"] + p["s_fc"]["b"]
    yt = jnp.swapaxes(y, 1, 2)
    yt = yt @ p["t_fc1"]["w"] + p["t_fc1"]["b"]
    yt = yt @ p["t_fc2"]["w"] + p["t_fc2"]["b"]
    return jnp.swapaxes(yt, 1, 2)


# =====================================================================
# Deterministic parameter init (PyTorch nn.Linear default init style)
# =====================================================================
def init_params(key, in_embd, out_embd, in_block, out_block):
    ks = jax.random.split(key, 3)

    def lin(k, fin, fout):
        kw, kb = jax.random.split(k)
        bound = 1.0 / math.sqrt(fin)
        return {"w": jax.random.uniform(kw, (fin, fout), jnp.float32, -bound, bound),
                "b": jax.random.uniform(kb, (fout,), jnp.float32, -bound, bound)}

    return {"s_fc": lin(ks[0], in_embd, out_embd),
            "t_fc1": lin(ks[1], in_block, out_block * 4),
            "t_fc2": lin(ks[2], out_block * 4, out_block)}


# =====================================================================
if __name__ == "__main__":
    # Shapes consistent with how the model uses ProjectionHead:
    #   ProjectionHead(in_embd=J*3*2=24, out_embd=n_embd=48, in_block=T=8, out_block=T=8)
    B, IN_BLOCK, OUT_BLOCK = 2, 8, 8
    IN_EMBD, OUT_EMBD = 24, 48

    key = jax.random.PRNGKey(0)
    pkey, xkey = jax.random.split(key)
    params = init_params(pkey, IN_EMBD, OUT_EMBD, IN_BLOCK, OUT_BLOCK)
    x = jax.random.normal(xkey, (B, IN_BLOCK, IN_EMBD), jnp.float32)

    prepared = jax.tree_util.tree_map(jax.block_until_ready, prepare_params(params))

    out = projection_head(x, prepared)
    out = jax.block_until_ready(out)

    assert out.shape == (B, OUT_BLOCK, OUT_EMBD), out.shape
    assert bool(jnp.all(jnp.isfinite(out)))

    ref = projection_head_reference(x, params)
    err = float(jnp.max(jnp.abs(out - ref)))
    assert bool(jnp.allclose(out, ref, rtol=1e-2, atol=1e-2)), err

    print("KERNEL_OK")
</pallas_src>

<mosaic_0001>
module attributes {stable_mosaic.version = 11 : i64} {
  func.func @_projection_head_kernel(%arg0: memref<2x8x24xf32, #tpu.memory_space<vmem>>, %arg1: memref<24x48xf32, #tpu.memory_space<vmem>>, %arg2: memref<8x8xf32, #tpu.memory_space<vmem>>, %arg3: memref<8x48xf32, #tpu.memory_space<vmem>>, %arg4: memref<2x8x48xf32, #tpu.memory_space<vmem>>) attributes {dimension_semantics = [], scalar_prefetch = 0 : i64, scratch_operands = 0 : i64, tpu.core_type = #tpu.core_type<tc>} {
    %c0 = arith.constant 0 : index
    %c0_0 = arith.constant 0 : index
    %0 = vector.load %arg1[%c0, %c0_0] : memref<24x48xf32, #tpu.memory_space<vmem>>, vector<24x48xf32>
    %c0_1 = arith.constant 0 : index
    %c0_2 = arith.constant 0 : index
    %1 = vector.load %arg2[%c0_1, %c0_2] : memref<8x8xf32, #tpu.memory_space<vmem>>, vector<8x8xf32>
    %c0_3 = arith.constant 0 : index
    %c0_4 = arith.constant 0 : index
    %2 = vector.load %arg3[%c0_3, %c0_4] : memref<8x48xf32, #tpu.memory_space<vmem>>, vector<8x48xf32>
    %c0_5 = arith.constant 0 : index
    %c0_6 = arith.constant 0 : index
    %c0_7 = arith.constant 0 : index
    %3 = vector.load %arg0[%c0_5, %c0_6, %c0_7] : memref<2x8x24xf32, #tpu.memory_space<vmem>>, vector<1x8x24xf32>
    %4 = vector.shape_cast %3 : vector<1x8x24xf32> to vector<8x24xf32>
    %cst = arith.constant dense<0.000000e+00> : vector<8x48xf32>
    %5 = tpu.matmul %4, %0, %cst {dimension_numbers = #tpu.dot_dimension_numbers<[1], [0], [0], [1], [0, 0, 1, 1], [], []>} : vector<8x24xf32>, vector<24x48xf32>, vector<8x48xf32> -> vector<8x48xf32>
    %cst_8 = arith.constant dense<0.000000e+00> : vector<8x48xf32>
    %6 = tpu.matmul %1, %5, %cst_8 {dimension_numbers = #tpu.dot_dimension_numbers<[1], [0], [0], [1], [0, 0, 1, 1], [], []>} : vector<8x8xf32>, vector<8x48xf32>, vector<8x48xf32> -> vector<8x48xf32>
    %7 = arith.addf %6, %2 : vector<8x48xf32>
    %c0_9 = arith.constant 0 : index
    %c0_10 = arith.constant 0 : index
    %c0_11 = arith.constant 0 : index
    %8 = vector.load %arg4[%c0_9, %c0_10, %c0_11] : memref<2x8x48xf32, #tpu.memory_space<vmem>>, vector<1x8x48xf32>
    %9 = vector.shape_cast %8 : vector<1x8x48xf32> to vector<8x48xf32>
    %10 = vector.shape_cast %7 : vector<8x48xf32> to vector<1x8x48xf32>
    tpu.vector_store %arg4[%c0_9, %c0_10, %c0_11], %10 {strides = array<i32>} : memref<2x8x48xf32, #tpu.memory_space<vmem>>, vector<1x8x48xf32>,
    %c1 = arith.constant 1 : index
    %c0_12 = arith.constant 0 : index
    %c0_13 = arith.constant 0 : index
    %11 = vector.load %arg0[%c1, %c0_12, %c0_13] : memref<2x8x24xf32, #tpu.memory_space<vmem>>, vector<1x8x24xf32>
    %12 = vector.shape_cast %11 : vector<1x8x24xf32> to vector<8x24xf32>
    %cst_14 = arith.constant dense<0.000000e+00> : vector<8x48xf32>
    %13 = tpu.matmul %12, %0, %cst_14 {dimension_numbers = #tpu.dot_dimension_numbers<[1], [0], [0], [1], [0, 0, 1, 1], [], []>} : vector<8x24xf32>, vector<24x48xf32>, vector<8x48xf32> -> vector<8x48xf32>
    %cst_15 = arith.constant dense<0.000000e+00> : vector<8x48xf32>
    %14 = tpu.matmul %1, %13, %cst_15 {dimension_numbers = #tpu.dot_dimension_numbers<[1], [0], [0], [1], [0, 0, 1, 1], [], []>} : vector<8x8xf32>, vector<8x48xf32>, vector<8x48xf32> -> vector<8x48xf32>
    %15 = arith.addf %14, %2 : vector<8x48xf32>
    %c1_16 = arith.constant 1 : index
    %c0_17 = arith.constant 0 : index
    %c0_18 = arith.constant 0 : index
    %16 = vector.load %arg4[%c1_16, %c0_17, %c0_18] : memref<2x8x48xf32, #tpu.memory_space<vmem>>, vector<1x8x48xf32>
    %17 = vector.shape_cast %16 : vector<1x8x48xf32> to vector<8x48xf32>
    %18 = vector.shape_cast %15 : vector<8x48xf32> to vector<1x8x48xf32>
    tpu.vector_store %arg4[%c1_16, %c0_17, %c0_18], %18 {strides = array<i32>} : memref<2x8x48xf32, #tpu.memory_space<vmem>>, vector<1x8x48xf32>,
    return
  }
}

</mosaic_0001>

<bundles_post_ra>
// kernel: projection_head.1
= control target key start
LH: loop header
LB: loop body
LE: loop exit
PB: predicated region body
PF: predicated region fallthrough
CT: control target
= control target key end

     0   :  { %9 = vsyncpa [#allocation3], 0  ;;  %s640_s0 = inlined_call_operand.hbm [shape: f32[2,8,24], index: 0, kind: input, shape index: {}]   ;;  %s641_s1 = inlined_call_operand.hbm [shape: f32[24,48], index: 1, kind: input, shape index: {}]   ;;  %s642_s2 = inlined_call_operand.vmem [shape: f32[8,8], index: 2, kind: input, shape index: {}]   ;;  %s643_s3 = inlined_call_operand.hbm [shape: f32[8,48], index: 3, kind: input, shape index: {}]   ;;  %s644_s4 = inlined_call_operand.hbm [shape: f32[2,8,48], index: 4, kind: output, shape index: {}]  }
   0x1   :  { %10 = vsyncpa [#allocation6], 0 }
   0x2   :  { %11 = vsyncpa [#allocation4], 0  ;;  %s531_s15 = smov [#allocation5]   ;;  %s532_s17 = smov [#allocation2]  }
   0x3   :  { %s29_s16 = sshll.u32 %s531_s15, 4  ;;  %s17_s18 = sshll.u32 %s532_s17, 4  ;;  %s30_s16 = int_to_ptr.vmem [resolvable:$true] %s29_s16  ;;  %s565_s18 = int_to_ptr.vmem [resolvable:$true] %s17_s18 }
   0x4   :  { %s437_s21 = scalar_lea.hbm %s641_s1, 384 }
   0x5   :  { %p438_p0 = scmp.ne.s32.totalorder %s641_s1, %s437_s21  ;;  %p441_p1 = scmp.lt.u32.totalorder %s437_s21, %s641_s1 }
   0x7   :  { %p443_p2 = pnand %p441_p1, %p438_p0 }
   0x9   :  { %446 = shalt.err (!%p443_p2)
}
   0xa   :  { %s447_s26 = scalar_lea.vmem %s30_s16, 384  ;;  %p452_p4 = scmp.lt.s32.totalorder %s30_s16, %s30_s16 }
   0xb   :  { %p448_p3 = scmp.ne.s32.totalorder %s30_s16, %s447_s26  ;;  %p453_p5 = scmp.lt.s32.totalorder %s447_s26, %s447_s26 }
   0xd   :  { %p454_p6 = por %p453_p5, %p452_p4 }
   0xf   :  { %p455_p7 = pnand %p454_p6, %p448_p3 }
  0x11   :  { %458 = shalt.err (!%p455_p7)
}
  0x12   :  { %s533_s27 = smov 128   ;;  %s534_s28 = smov 8  }
  0x13   :  { %35 = dma.hbm_to_vmem [thread:$0]  %s641_s1, 384, %s30_s16, [#allocation6], %s533_s27, %s533_s27, %s534_s28  }
  0x14   :  { %s459_s7 = scalar_lea.hbm %s640_s0, 256 }
  0x15   :  { %p460_p8 = scmp.ne.s32.totalorder %s640_s0, %s459_s7  ;;  %p463_p9 = scmp.lt.u32.totalorder %s459_s7, %s640_s0 }
  0x17   :  { %p465_p10 = pnand %p463_p9, %p460_p8 }
  0x19   :  { %468 = shalt.err (!%p465_p10)
}
  0x1a   :  { %s469_s12 = scalar_lea.vmem %s565_s18, 256  ;;  %p474_p12 = scmp.lt.s32.totalorder %s565_s18, %s565_s18 }
  0x1b   :  { %p470_p11 = scmp.ne.s32.totalorder %s565_s18, %s469_s12  ;;  %p475_p13 = scmp.lt.s32.totalorder %s469_s12, %s469_s12 }
  0x1d   :  { %p476_p0 = por %p475_p13, %p474_p12 }
  0x1f   :  { %p477_p1 = pnand %p476_p0, %p470_p11 }
  0x21   :  { %480 = shalt.err (!%p477_p1)
}
  0x22   :  { %23 = dma.hbm_to_vmem [thread:$0]  %s640_s0, 256, %s565_s18, [#allocation3], %s533_s27, %s533_s27, %s534_s28  }
  0x23   :  { %s535_s14 = smov [#allocation7]   ;;  %s481_s19 = scalar_lea.hbm %s643_s3, 128 }
  0x24   :  { %s44_s15 = sshll.u32 %s535_s14, 4  ;;  %p482_p2 = scmp.ne.s32.totalorder %s643_s3, %s481_s19  ;;  %s45_s15 = int_to_ptr.vmem [resolvable:$true] %s44_s15 }
  0x25   :  { %p485_p3 = scmp.lt.u32.totalorder %s481_s19, %s643_s3 }
  0x27   :  { %p487_p4 = pnand %p485_p3, %p482_p2 }
  0x29   :  { %490 = shalt.err (!%p487_p4)
}
  0x2a   :  { %s491_s24 = scalar_lea.vmem %s45_s15, 128  ;;  %p496_p6 = scmp.lt.s32.totalorder %s45_s15, %s45_s15 }
  0x2b   :  { %p492_p5 = scmp.ne.s32.totalorder %s45_s15, %s491_s24  ;;  %p497_p7 = scmp.lt.s32.totalorder %s491_s24, %s491_s24 }
  0x2d   :  { %p498_p8 = por %p497_p7, %p496_p6 }
  0x2f   :  { %p499_p9 = pnand %p498_p8, %p492_p5 }
  0x31   :  { %502 = shalt.err (!%p499_p9)
}
  0x32   :  { %47 = dma.hbm_to_vmem [thread:$0]  %s643_s3, 128, %s45_s15, [#allocation6]  }
  0x33   :  { %525 = dma.done.wait [#allocation3], 256  }
  0x34   :  { %526 = vsyncadd [#allocation3], 4294967040 }
  0x35   :  { %527 = dma.done.wait [#allocation6], 512  }
  0x36   :  { %528 = vsyncadd [#allocation6], 4294966784  ;;  %v536_v0 = vmov 0.0|0.0   ;;  %vm537_vm0 = vmmov 0   ;;  %v538_v1 = vmov 0.0   ;;  %v57_v2 = vld [vmem:[#allocation5] sm:$0xff] }
  0x37   :  { %422 = vmatprep.subr.bf16.mxu0 %v536_v0  ;;  %400 = vmatprep.mubr.msk.f32.mxu0 %vm537_vm0, %v538_v1  ;;  %v58_v3 = vld [vmem:[#allocation5 + $0x8] sm:$0xff]  ;;  %v59_v5 = vld [vmem:[#allocation5 + $0x10] sm:$0xff]  ;;  %vm63_vm1 = vcmask 195584   ;;  %vm137_vm2 = vcmask 64512   ;;  %v214_v10 = vld [vmem:[#allocation2 + $0x8] sm:$0xff]  ;;  %vm211_vm3 = vcmask 392192  }
  0x38   :  { %403 = vmatprep.subr.mxu1 %v538_v1  ;;  %405 = vmatprep.mubr.msk.f32.mxu1 %vm537_vm0, %v538_v1  ;;  %v423_v4 = vpack.c.bf16 %v58_v3, %v57_v2  ;;  %v62_v6 = vld [vmem:[#allocation2] sm:$0xff]  ;;  %v61_v11 = vld [vmem:[#allocation7] sm:$0xff] }
  0x39   :  { %v60_v7 = vld [vmem:[%s642_s2] sm:$0xff]  ;;  %s539_s2 = smov [#allocation8]  }
  0x3a   :  { %424 = vmatpush3.bf16.msra.mxu0 %v423_v4  ;;  %s365_s26 = sshll.u32 %s539_s2, 4  ;;  %s366_s26 = int_to_ptr.vmem [resolvable:$true] %s365_s26 }
  0x3b   :  { %398 = vmatprep.subr.mxu0 %v538_v1  ;;  %s503_s29 = scalar_lea.vmem %s366_s26, 256  ;;  %p508_p11 = scmp.lt.s32.totalorder %s366_s26, %s366_s26 }
  0x3c   :  { %p504_p10 = scmp.ne.s32.totalorder %s366_s26, %s503_s29  ;;  %p509_p12 = scmp.lt.s32.totalorder %s503_s29, %s503_s29 }
  0x3e   :  { %399 = vmatpush3.msra.mxu0 %v59_v5  ;;  %p510_p13 = por %p509_p12, %p508_p11 }
  0x3f   :  { %401 = vmatmul.mubr.msk.f32.vlgmr.msra.gmra.mrb[0].mxu0 %vm63_vm1, %v62_v6  ;;  %417 = vmatprep.subr.mxu0 %v538_v1 }
  0x40   :  { %419 = vmatprep.mubr.msk.f32.mxu0 %vm537_vm0, %v538_v1  ;;  %p511_p0 = pnand %p510_p13, %p504_p10 }
 0x112   :  { %v133_v8 = vpop.f32.mrb[0].mxu0 }
 0x113   :  { %v402_v9 = vpop.f32.mrb[1].mxu0  ;;  %404 = vmatpush3.msra.mxu1 %v133_v8 }
 0x114   :  { %406 = vmatmul.mubr.msk.f32.vlgmr.msra.gmra.mrb[0].mxu1 %vm137_vm2, %v60_v7  ;;  %425 = vmatprep.subr.bf16.mxu1 %v536_v0 }
 0x115   :  { %427 = vmatpush3.bf16.msra.mxu1 %v423_v4  ;;  %414 = vmatprep.mubr.msk.f32.mxu1 %vm537_vm0, %v538_v1 }
 0x116   :  { %412 = vmatprep.subr.mxu1 %v538_v1 }
 0x119   :  { %413 = vmatpush3.msra.mxu1 %v59_v5 }
 0x11a   :  { %415 = vmatmul.mubr.msk.f32.vlgmr.msra.gmra.mrb[2].mxu1 %vm63_vm1, %v214_v10 }
 0x1e7   :  { %v207_v12 = vpop.f32.mrb[0].mxu1 }
 0x1e8   :  { %v208_v13 = vadd.f32 %v207_v12, %v61_v11  ;;  %v407_v14 = vpop.f32.mrb[1].mxu1 }
 0x1ea   :  { %212 = vst.msk [vmem:[#allocation8] sm:$0xff] %vm211_vm3, %v208_v13 }
 0x1ed   :  { %v284_v15 = vpop.f32.mrb[2].mxu1 }
 0x1ee   :  { %v416_v16 = vpop.f32.mrb[3].mxu1  ;;  %418 = vmatpush3.msra.mxu0 %v284_v15 }
 0x1ef   :  { %420 = vmatmul.mubr.msk.f32.vlgmr.msra.gmra.mrb[2].mxu0 %vm137_vm2, %v60_v7 }
 0x2c2   :  { %v354_v17 = vpop.f32.mrb[2].mxu0 }
 0x2c3   :  { %v355_v18 = vadd.f32 %v354_v17, %v61_v11  ;;  %v421_v19 = vpop.f32.mrb[3].mxu0 }
 0x2c5   :  { %359 = vst.msk [vmem:[#allocation8 + $0x8] sm:$0xff] %vm211_vm3, %v355_v18 }
 0x2c6   :  { %514 = shalt.err (!%p511_p0)
}
 0x2c7   :  { %s515_s6 = scalar_lea.hbm %s644_s4, 256 }
 0x2c8   :  { %p516_p1 = scmp.ne.s32.totalorder %s644_s4, %s515_s6  ;;  %p519_p2 = scmp.lt.u32.totalorder %s515_s6, %s644_s4 }
 0x2ca   :  { %p521_p3 = pnand %p519_p2, %p516_p1 }
 0x2cc   :  { %524 = shalt.err (!%p521_p3)
}
 0x2cd   :  { %371 = dma.vmem_to_hbm [thread:$0]  %s366_s26, 256, %s644_s4, [#allocation4], %s533_s27, %s533_s27, %s534_s28  }
 0x2ce   :  { %529 = dma.done.wait [#allocation4], 256  }
 0x2cf   :  { %530 = vsyncadd [#allocation4], 4294967040 }
 0x2d0   :  { %375 = vsyncpa [#allocation3], 1 }
 0x2d1   :  { %376 = vsyncpa [#allocation6], 1 }
 0x2d2   :  { %377 = vsyncpa [#allocation4], 1 }

</bundles_post_ra>
